<compile_context>
chip_gen: v7x
topology: tpu7x:2x2x1
jax: 0.10.0
libtpu: 0.0.40
codegen_flags: <defaults>
</compile_context>

<pallas_src>
import jax
import jax.numpy as jnp
import numpy as np
from jax.experimental import pallas as pl
from jax.experimental.pallas import tpu as pltpu

# ----------------------------- model constants -----------------------------
SELECT_FEATURE = [0, 1]            # FirstPath select_feature (only sets attention_num)
BERT_FEATURE_NUM = 1024            # SecPath feature_num
PDB_FEATURE_NUM = 37               # x[:, 37:] is the bert slice
EMBED = 32                         # MultiheadAttention embed_dim
ATTENTION_NUM = len(SELECT_FEATURE)  # classifier hidden = 2
NUM_CLASSES = 2

# ------------------------- packed weight-slab layout -------------------------
# Each piece gets full 128-lane width and an 8-sublane-aligned row offset so
# every in-kernel slice is tile-aligned (no masked / cross-tile loads).
_SLAB_LANES = 128
_SLAB_PIECES = [
    ("sb1",    (1, 32)),
    ("sw2",    (32, 64)),  ("sb2", (1, 64)),
    ("sw3",    (64, 128)), ("sb3", (1, 128)),
    ("sw4",    (128, 64)), ("sb4", (1, 64)),
    ("sw5",    (64, 32)),  ("sb5", (1, 32)),
    ("w_head", (32, ATTENTION_NUM)), ("b_head", (1, ATTENTION_NUM)),
    ("w_cls2", (ATTENTION_NUM, NUM_CLASSES)), ("b_cls2", (1, NUM_CLASSES)),
]


def _build_slab_layout():
    layout, row = {}, 0
    for name, (r, c) in _SLAB_PIECES:
        layout[name] = (row, r, c)
        row += ((r + 7) // 8) * 8          # pad each piece to a sublane multiple
    return layout, row


_SLAB_LAYOUT, _SLAB_ROWS = _build_slab_layout()   # -> 384 rows x 128 lanes (192 KiB)


def pack_slab(pieces):
    slab = np.zeros((_SLAB_ROWS, _SLAB_LANES), np.float32)
    for name, arr in pieces.items():
        row, r, c = _SLAB_LAYOUT[name]
        arr = np.asarray(arr, np.float32)
        assert arr.shape == (r, c), (name, arr.shape, (r, c))
        slab[row:row + r, :c] = arr
    return jnp.asarray(slab)


# ------------------------------ fused kernel ------------------------------
def _net_fused_kernel(pool_ref, xb_ref, sw1_ref, slab_ref, o_ref):
    f32 = jnp.float32

    def wread(name):
        row, r, c = _SLAB_LAYOUT[name]
        v = slab_ref[row:row + r, :]       # tile-aligned static slice of the slab
        return v[:, :c] if c < _SLAB_LANES else v

    # ---- SecPath (bert path): gap first ([B,N]x[N,1024] is far cheaper than
    # linear-first), then 5x (Linear + ReLU).  pool/x_bert/sp1 are bf16 MXU
    # operands with f32 accumulation; element-wise stays f32.
    g = jnp.dot(pool_ref[...], xb_ref[...], preferred_element_type=f32)        # [B,1024]
    g = jnp.maximum(jnp.dot(g.astype(jnp.bfloat16), sw1_ref[...],
                            preferred_element_type=f32) + wread("sb1"), 0.0)   # [B,32]
    g = jnp.maximum(jnp.dot(g, wread("sw2"), preferred_element_type=f32) + wread("sb2"), 0.0)
    g = jnp.maximum(jnp.dot(g, wread("sw3"), preferred_element_type=f32) + wread("sb3"), 0.0)
    g = jnp.maximum(jnp.dot(g, wread("sw4"), preferred_element_type=f32) + wread("sb4"), 0.0)
    x_bert = jnp.maximum(jnp.dot(g, wread("sw5"), preferred_element_type=f32)
                         + wread("sb5"), 0.0)                                   # [B,32]

    # ---- fusion (MHA with L=S=1 -> attention weight == 1) + out_proj +
    # classifier.linear1, pre-folded offline into a single [32,2] matmul.
    c = jnp.maximum(jnp.dot(x_bert, wread("w_head"), preferred_element_type=f32)
                    + wread("b_head"), 0.0)                                     # [B,2]

    # ---- classifier.class_head ----
    o_ref[...] = jnp.dot(c, wread("w_cls2"), preferred_element_type=f32) + wread("b_cls2")


# ------------------------------ Pallas wrapper ------------------------------
def _full_spec(shape):
    return pl.BlockSpec(shape, lambda i, _n=len(shape): (0,) * _n)


def _estimate_flops(n_nodes, b_graphs):
    # live work only (dead FirstPath removed)
    per_graph = (n_nodes * 1024            # gap
                 + 1024 * 32 + 32 * 64 + 64 * 128 + 128 * 64 + 64 * 32   # SecPath
                 + 32 * ATTENTION_NUM                                    # folded head
                 + ATTENTION_NUM * NUM_CLASSES)                          # class_head
    return 2 * b_graphs * per_graph


def net_forward_fused(pool_bf16, x_bert_bf16, sw1_bf16, slab):
    """Single fused pallas_call for the whole live Net forward."""
    b_graphs, n_nodes = pool_bf16.shape
    inputs = [pool_bf16, x_bert_bf16, sw1_bf16, slab]
    in_specs = [_full_spec(a.shape) for a in inputs]
    bytes_accessed = sum(int(a.size) * a.dtype.itemsize for a in inputs)
    bytes_accessed += b_graphs * NUM_CLASSES * 4

    return pl.pallas_call(
        _net_fused_kernel,
        grid=(1,),
        in_specs=in_specs,
        out_specs=_full_spec((b_graphs, NUM_CLASSES)),
        out_shape=jax.ShapeDtypeStruct((b_graphs, NUM_CLASSES), jnp.float32),
        compiler_params=pltpu.CompilerParams(
            dimension_semantics=("arbitrary",)),
        cost_estimate=pl.CostEstimate(
            flops=int(_estimate_flops(n_nodes, b_graphs)),
            transcendentals=0,
            bytes_accessed=int(bytes_accessed)),
    )(*inputs)


# ------------------------------ parameter init ------------------------------
def init_linear(key, fan_in, fan_out):
    kw, kb = jax.random.split(key)
    bound = 1.0 / np.sqrt(fan_in)
    w = jax.random.uniform(kw, (fan_in, fan_out), jnp.float32, -bound, bound)
    b = jax.random.uniform(kb, (fan_out,), jnp.float32, -bound, bound)
    return w, b


def init_params(key):
    # NOTE: FirstPath (GCN stack + its two linears) parameters exist in the
    # PyTorch module but are provably dead under fusion_mode='attention'
    # (softmax over one key == 1); they are not instantiated or transferred.
    keys = jax.random.split(key, 16)
    it = iter(keys)
    p = {}
    # SecPath: 1024 -> 32 -> 64 -> 128 -> 64 -> 32
    p["sp1"] = init_linear(next(it), BERT_FEATURE_NUM, 32)
    p["sp2"] = init_linear(next(it), 32, 64)
    p["sp3"] = init_linear(next(it), 64, 128)
    p["sp4"] = init_linear(next(it), 128, 64)
    p["sp5"] = init_linear(next(it), 64, 32)
    # MultiheadAttention(32, 4): q/k are dead under L=S=1 (kept for fidelity)
    wq, bq = init_linear(next(it), EMBED, EMBED)
    wk, bk = init_linear(next(it), EMBED, EMBED)
    wv, bv = init_linear(next(it), EMBED, EMBED)
    wo, bo = init_linear(next(it), EMBED, EMBED)
    p["mha"] = (wq, wk, wv, bq, bk, bv, wo, bo)
    # AttentionClassifier: 32 -> attention_num(=2) -> num_classes(=2)
    p["cls1"] = init_linear(next(it), EMBED, ATTENTION_NUM)
    p["cls2"] = init_linear(next(it), ATTENTION_NUM, NUM_CLASSES)
    return p


def prepare_inference_params(p):
    """Offline folding + slab packing.

    Folds the no-ReLU chain value_proj -> out_proj -> classifier.linear1 into
    one [32, attention_num] matrix + bias, then packs every small weight/bias
    into a single lane-padded f32 slab (one DMA instead of ~20)."""
    _wq, _wk, wv, _bq, _bk, bv, wo, bo = p["mha"]       # q/k projections are dead
    cw1, cb1 = p["cls1"]
    cw2, cb2 = p["cls2"]
    wv, bv, wo, bo = map(lambda a: np.asarray(a, np.float32), (wv, bv, wo, bo))
    cw1, cb1, cw2, cb2 = map(lambda a: np.asarray(a, np.float32), (cw1, cb1, cw2, cb2))
    w_head = wv @ wo @ cw1                               # [32, 2]
    b_head = (bv @ wo + bo) @ cw1 + cb1                  # [2]

    sw1, sb1 = p["sp1"]
    pieces = {"sb1": np.asarray(sb1, np.float32).reshape(1, -1)}
    for idx in (2, 3, 4, 5):
        w, b = p[f"sp{idx}"]
        pieces[f"sw{idx}"] = np.asarray(w, np.float32)
        pieces[f"sb{idx}"] = np.asarray(b, np.float32).reshape(1, -1)
    pieces["w_head"] = w_head
    pieces["b_head"] = b_head.reshape(1, -1)
    pieces["w_cls2"] = cw2
    pieces["b_cls2"] = cb2.reshape(1, -1)

    slab = pack_slab(pieces)
    # sp1 weight feeds the only non-trivial weight matmul; bf16 operand, f32 acc.
    return jnp.asarray(sw1, jnp.bfloat16), slab


# ------------------------------ graph preprocessing ------------------------------
def build_pool_matrix(batch, n_graphs):
    # global_mean_pool as a matmul: P[b, n] = 1/|graph b| if batch[n] == b
    one_hot = (batch[None, :] == jnp.arange(n_graphs)[:, None]).astype(jnp.float32)
    return one_hot / one_hot.sum(axis=1, keepdims=True)


# ------------------------------------ main ------------------------------------
if __name__ == "__main__":
    N_GRAPHS = 2
    NODES_PER_GRAPH = 8
    N_NODES = N_GRAPHS * NODES_PER_GRAPH
    FEATURE_DIM = PDB_FEATURE_NUM + BERT_FEATURE_NUM          # 1061

    key = jax.random.PRNGKey(0)
    k_x, k_params = jax.random.split(key)

    # synthetic PyG-style Data: x [N, 1061], batch [N].  edge_index only feeds
    # the dead FirstPath (GCN) and is therefore not constructed.
    x = jax.random.normal(k_x, (N_NODES, FEATURE_DIM), jnp.float32)
    batch = jnp.repeat(jnp.arange(N_GRAPHS, dtype=jnp.int32), NODES_PER_GRAPH)

    # gap pooling matrix and bert slice, prepared once as bf16 MXU operands
    pool = build_pool_matrix(batch, N_GRAPHS).astype(jnp.bfloat16)         # [B, N]
    x_bert = x[:, PDB_FEATURE_NUM:].astype(jnp.bfloat16)                   # [N, 1024]

    params = init_params(k_params)
    sw1_bf16, slab = prepare_inference_params(params)

    fwd = jax.jit(net_forward_fused)
    out = jax.block_until_ready(fwd(pool, x_bert, sw1_bf16, slab))         # [B, 2] logits
    assert out.shape == (N_GRAPHS, NUM_CLASSES) and out.dtype == jnp.float32
    assert bool(jnp.all(jnp.isfinite(out)))
    print("KERNEL_OK")
</pallas_src>

<mosaic_0001>
module attributes {stable_mosaic.version = 11 : i64} {
  func.func @_net_fused_kernel(%arg0: i32, %arg1: memref<2x16xbf16, #tpu.memory_space<vmem>>, %arg2: memref<16x1024xbf16, #tpu.memory_space<vmem>>, %arg3: memref<1024x32xbf16, #tpu.memory_space<vmem>>, %arg4: memref<384x128xf32, #tpu.memory_space<vmem>>, %arg5: memref<2x2xf32, #tpu.memory_space<vmem>>) attributes {dimension_semantics = [#tpu.dimension_semantics<arbitrary>], iteration_bounds = array<i64: 1>, scalar_prefetch = 0 : i64, scratch_operands = 0 : i64, tpu.core_type = #tpu.core_type<tc>, window_params = [{pipeline_mode = #tpu.pipeline_mode<synchronous>, transform_indices = @transform_0, window_bounds = array<i64: 2, 16>}, {pipeline_mode = #tpu.pipeline_mode<synchronous>, transform_indices = @transform_1, window_bounds = array<i64: 16, 1024>}, {pipeline_mode = #tpu.pipeline_mode<synchronous>, transform_indices = @transform_2, window_bounds = array<i64: 1024, 32>}, {pipeline_mode = #tpu.pipeline_mode<synchronous>, transform_indices = @transform_3, window_bounds = array<i64: 384, 128>}, {pipeline_mode = #tpu.pipeline_mode<synchronous>, transform_indices = @transform_4, window_bounds = array<i64: 2, 2>}]} {
    %c0 = arith.constant 0 : index
    %c0_0 = arith.constant 0 : index
    %0 = vector.load %arg1[%c0, %c0_0] : memref<2x16xbf16, #tpu.memory_space<vmem>>, vector<2x16xbf16>
    %c0_1 = arith.constant 0 : index
    %c0_2 = arith.constant 0 : index
    %1 = vector.load %arg2[%c0_1, %c0_2] : memref<16x1024xbf16, #tpu.memory_space<vmem>>, vector<16x1024xbf16>
    %cst = arith.constant dense<0.000000e+00> : vector<2x1024xf32>
    %2 = tpu.matmul %0, %1, %cst {dimension_numbers = #tpu.dot_dimension_numbers<[1], [0], [0], [1], [0, 0, 1, 1], [], []>} : vector<2x16xbf16>, vector<16x1024xbf16>, vector<2x1024xf32> -> vector<2x1024xf32>
    %3 = arith.truncf %2 : vector<2x1024xf32> to vector<2x1024xbf16>
    %c0_3 = arith.constant 0 : index
    %c0_4 = arith.constant 0 : index
    %4 = vector.load %arg3[%c0_3, %c0_4] : memref<1024x32xbf16, #tpu.memory_space<vmem>>, vector<1024x32xbf16>
    %cst_5 = arith.constant dense<0.000000e+00> : vector<2x32xf32>
    %5 = tpu.matmul %3, %4, %cst_5 {dimension_numbers = #tpu.dot_dimension_numbers<[1], [0], [0], [1], [0, 0, 1, 1], [], []>} : vector<2x1024xbf16>, vector<1024x32xbf16>, vector<2x32xf32> -> vector<2x32xf32>
    %c0_6 = arith.constant 0 : index
    %c0_7 = arith.constant 0 : index
    %6 = vector.load %arg4[%c0_6, %c0_7] : memref<384x128xf32, #tpu.memory_space<vmem>>, vector<1x128xf32>
    %7 = vector.extract_strided_slice %6 {offsets = [0, 0], sizes = [1, 32], strides = [1, 1]} : vector<1x128xf32> to vector<1x32xf32>
    %8 = vector.broadcast %7 : vector<1x32xf32> to vector<2x32xf32>
    %9 = arith.addf %5, %8 : vector<2x32xf32>
    %cst_8 = arith.constant 0.000000e+00 : f32
    %10 = vector.broadcast %cst_8 : f32 to vector<2x32xf32>
    %11 = arith.maximumf %9, %10 : vector<2x32xf32>
    %c8 = arith.constant 8 : index
    %c0_9 = arith.constant 0 : index
    %12 = vector.load %arg4[%c8, %c0_9] : memref<384x128xf32, #tpu.memory_space<vmem>>, vector<32x128xf32>
    %13 = vector.extract_strided_slice %12 {offsets = [0, 0], sizes = [32, 64], strides = [1, 1]} : vector<32x128xf32> to vector<32x64xf32>
    %cst_10 = arith.constant dense<0.000000e+00> : vector<2x64xf32>
    %14 = tpu.matmul %11, %13, %cst_10 {dimension_numbers = #tpu.dot_dimension_numbers<[1], [0], [0], [1], [0, 0, 1, 1], [], []>} : vector<2x32xf32>, vector<32x64xf32>, vector<2x64xf32> -> vector<2x64xf32>
    %c40 = arith.constant 40 : index
    %c0_11 = arith.constant 0 : index
    %15 = vector.load %arg4[%c40, %c0_11] : memref<384x128xf32, #tpu.memory_space<vmem>>, vector<1x128xf32>
    %16 = vector.extract_strided_slice %15 {offsets = [0, 0], sizes = [1, 64], strides = [1, 1]} : vector<1x128xf32> to vector<1x64xf32>
    %17 = vector.broadcast %16 : vector<1x64xf32> to vector<2x64xf32>
    %18 = arith.addf %14, %17 : vector<2x64xf32>
    %cst_12 = arith.constant 0.000000e+00 : f32
    %19 = vector.broadcast %cst_12 : f32 to vector<2x64xf32>
    %20 = arith.maximumf %18, %19 : vector<2x64xf32>
    %c48 = arith.constant 48 : index
    %c0_13 = arith.constant 0 : index
    %21 = vector.load %arg4[%c48, %c0_13] : memref<384x128xf32, #tpu.memory_space<vmem>>, vector<64x128xf32>
    %cst_14 = arith.constant dense<0.000000e+00> : vector<2x128xf32>
    %22 = tpu.matmul %20, %21, %cst_14 {dimension_numbers = #tpu.dot_dimension_numbers<[1], [0], [0], [1], [0, 0, 1, 1], [], []>} : vector<2x64xf32>, vector<64x128xf32>, vector<2x128xf32> -> vector<2x128xf32>
    %c112 = arith.constant 112 : index
    %c0_15 = arith.constant 0 : index
    %23 = vector.load %arg4[%c112, %c0_15] : memref<384x128xf32, #tpu.memory_space<vmem>>, vector<1x128xf32>
    %24 = vector.broadcast %23 : vector<1x128xf32> to vector<2x128xf32>
    %25 = arith.addf %22, %24 : vector<2x128xf32>
    %cst_16 = arith.constant 0.000000e+00 : f32
    %26 = vector.broadcast %cst_16 : f32 to vector<2x128xf32>
    %27 = arith.maximumf %25, %26 : vector<2x128xf32>
    %c120 = arith.constant 120 : index
    %c0_17 = arith.constant 0 : index
    %28 = vector.load %arg4[%c120, %c0_17] : memref<384x128xf32, #tpu.memory_space<vmem>>, vector<128x128xf32>
    %29 = vector.extract_strided_slice %28 {offsets = [0, 0], sizes = [128, 64], strides = [1, 1]} : vector<128x128xf32> to vector<128x64xf32>
    %cst_18 = arith.constant dense<0.000000e+00> : vector<2x64xf32>
    %30 = tpu.matmul %27, %29, %cst_18 {dimension_numbers = #tpu.dot_dimension_numbers<[1], [0], [0], [1], [0, 0, 1, 1], [], []>} : vector<2x128xf32>, vector<128x64xf32>, vector<2x64xf32> -> vector<2x64xf32>
    %c248 = arith.constant 248 : index
    %c0_19 = arith.constant 0 : index
    %31 = vector.load %arg4[%c248, %c0_19] : memref<384x128xf32, #tpu.memory_space<vmem>>, vector<1x128xf32>
    %32 = vector.extract_strided_slice %31 {offsets = [0, 0], sizes = [1, 64], strides = [1, 1]} : vector<1x128xf32> to vector<1x64xf32>
    %33 = vector.broadcast %32 : vector<1x64xf32> to vector<2x64xf32>
    %34 = arith.addf %30, %33 : vector<2x64xf32>
    %cst_20 = arith.constant 0.000000e+00 : f32
    %35 = vector.broadcast %cst_20 : f32 to vector<2x64xf32>
    %36 = arith.maximumf %34, %35 : vector<2x64xf32>
    %c256 = arith.constant 256 : index
    %c0_21 = arith.constant 0 : index
    %37 = vector.load %arg4[%c256, %c0_21] : memref<384x128xf32, #tpu.memory_space<vmem>>, vector<64x128xf32>
    %38 = vector.extract_strided_slice %37 {offsets = [0, 0], sizes = [64, 32], strides = [1, 1]} : vector<64x128xf32> to vector<64x32xf32>
    %cst_22 = arith.constant dense<0.000000e+00> : vector<2x32xf32>
    %39 = tpu.matmul %36, %38, %cst_22 {dimension_numbers = #tpu.dot_dimension_numbers<[1], [0], [0], [1], [0, 0, 1, 1], [], []>} : vector<2x64xf32>, vector<64x32xf32>, vector<2x32xf32> -> vector<2x32xf32>
    %c320 = arith.constant 320 : index
    %c0_23 = arith.constant 0 : index
    %40 = vector.load %arg4[%c320, %c0_23] : memref<384x128xf32, #tpu.memory_space<vmem>>, vector<1x128xf32>
    %41 = vector.extract_strided_slice %40 {offsets = [0, 0], sizes = [1, 32], strides = [1, 1]} : vector<1x128xf32> to vector<1x32xf32>
    %42 = vector.broadcast %41 : vector<1x32xf32> to vector<2x32xf32>
    %43 = arith.addf %39, %42 : vector<2x32xf32>
    %cst_24 = arith.constant 0.000000e+00 : f32
    %44 = vector.broadcast %cst_24 : f32 to vector<2x32xf32>
    %45 = arith.maximumf %43, %44 : vector<2x32xf32>
    %c328 = arith.constant 328 : index
    %c0_25 = arith.constant 0 : index
    %46 = vector.load %arg4[%c328, %c0_25] : memref<384x128xf32, #tpu.memory_space<vmem>>, vector<32x128xf32>
    %47 = vector.extract_strided_slice %46 {offsets = [0, 0], sizes = [32, 2], strides = [1, 1]} : vector<32x128xf32> to vector<32x2xf32>
    %cst_26 = arith.constant dense<0.000000e+00> : vector<2x2xf32>
    %48 = tpu.matmul %45, %47, %cst_26 {dimension_numbers = #tpu.dot_dimension_numbers<[1], [0], [0], [1], [0, 0, 1, 1], [], []>} : vector<2x32xf32>, vector<32x2xf32>, vector<2x2xf32> -> vector<2x2xf32>
    %c360 = arith.constant 360 : index
    %c0_27 = arith.constant 0 : index
    %49 = vector.load %arg4[%c360, %c0_27] : memref<384x128xf32, #tpu.memory_space<vmem>>, vector<1x128xf32>
    %50 = vector.extract_strided_slice %49 {offsets = [0, 0], sizes = [1, 2], strides = [1, 1]} : vector<1x128xf32> to vector<1x2xf32>
    %51 = vector.broadcast %50 : vector<1x2xf32> to vector<2x2xf32>
    %52 = arith.addf %48, %51 : vector<2x2xf32>
    %cst_28 = arith.constant 0.000000e+00 : f32
    %53 = vector.broadcast %cst_28 : f32 to vector<2x2xf32>
    %54 = arith.maximumf %52, %53 : vector<2x2xf32>
    %c368 = arith.constant 368 : index
    %c0_29 = arith.constant 0 : index
    %55 = vector.load %arg4[%c368, %c0_29] : memref<384x128xf32, #tpu.memory_space<vmem>>, vector<2x128xf32>
    %56 = vector.extract_strided_slice %55 {offsets = [0, 0], sizes = [2, 2], strides = [1, 1]} : vector<2x128xf32> to vector<2x2xf32>
    %cst_30 = arith.constant dense<0.000000e+00> : vector<2x2xf32>
    %57 = tpu.matmul %54, %56, %cst_30 {dimension_numbers = #tpu.dot_dimension_numbers<[1], [0], [0], [1], [0, 0, 1, 1], [], []>} : vector<2x2xf32>, vector<2x2xf32>, vector<2x2xf32> -> vector<2x2xf32>
    %c376 = arith.constant 376 : index
    %c0_31 = arith.constant 0 : index
    %58 = vector.load %arg4[%c376, %c0_31] : memref<384x128xf32, #tpu.memory_space<vmem>>, vector<1x128xf32>
    %59 = vector.extract_strided_slice %58 {offsets = [0, 0], sizes = [1, 2], strides = [1, 1]} : vector<1x128xf32> to vector<1x2xf32>
    %60 = vector.broadcast %59 : vector<1x2xf32> to vector<2x2xf32>
    %61 = arith.addf %57, %60 : vector<2x2xf32>
    %c0_32 = arith.constant 0 : index
    %c0_33 = arith.constant 0 : index
    %62 = vector.load %arg5[%c0_32, %c0_33] : memref<2x2xf32, #tpu.memory_space<vmem>>, vector<2x2xf32>
    tpu.vector_store %arg5[%c0_32, %c0_33], %61 {strides = array<i32>} : memref<2x2xf32, #tpu.memory_space<vmem>>, vector<2x2xf32>,
    return
  }
  func.func @transform_0(%arg0: i32) -> (i32, i32) {
    %c0_i32 = arith.constant 0 : i32
    %c0_i32_0 = arith.constant 0 : i32
    %c0_i32_1 = arith.constant 0 : i32
    return %c0_i32, %c0_i32_0 : i32, i32
  }
  func.func @transform_1(%arg0: i32) -> (i32, i32) {
    %c0_i32 = arith.constant 0 : i32
    %c0_i32_0 = arith.constant 0 : i32
    %c0_i32_1 = arith.constant 0 : i32
    return %c0_i32, %c0_i32_0 : i32, i32
  }
  func.func @transform_2(%arg0: i32) -> (i32, i32) {
    %c0_i32 = arith.constant 0 : i32
    %c0_i32_0 = arith.constant 0 : i32
    %c0_i32_1 = arith.constant 0 : i32
    return %c0_i32, %c0_i32_0 : i32, i32
  }
  func.func @transform_3(%arg0: i32) -> (i32, i32) {
    %c0_i32 = arith.constant 0 : i32
    %c0_i32_0 = arith.constant 0 : i32
    %c0_i32_1 = arith.constant 0 : i32
    return %c0_i32, %c0_i32_0 : i32, i32
  }
  func.func @transform_4(%arg0: i32) -> (i32, i32) {
    %c0_i32 = arith.constant 0 : i32
    %c0_i32_0 = arith.constant 0 : i32
    %c0_i32_1 = arith.constant 0 : i32
    return %c0_i32, %c0_i32_0 : i32, i32
  }
}

</mosaic_0001>

<bundles_post_ra>
// kernel: net_forward_fused.1
= control target key start
LH: loop header
LB: loop body
LE: loop exit
PB: predicated region body
PF: predicated region fallthrough
CT: control target
= control target key end

     0   :  { %v1933_v6 = vmov 0   ;;  %vm68_vm0 = vcmask 130048   ;;  %s2379_s0 = inlined_call_operand.vmem [shape: bf16[2,16], index: 0, kind: input, shape index: {}]   ;;  %s2380_s1 = inlined_call_operand.vmem [shape: bf16[16,1024], index: 1, kind: input, shape index: {}]   ;;  %s2381_s2 = inlined_call_operand.vmem [shape: bf16[1024,32], index: 2, kind: input, shape index: {}]   ;;  %s2382_s3 = inlined_call_operand.vmem [shape: f32[384,128], index: 3, kind: input, shape index: {}]   ;;  %s2383_s4 = inlined_call_operand.hbm [shape: f32[2,2], index: 4, kind: output, shape index: {}]  }
   0x1   :  { %v20_v0 = vld [vmem:[%s2380_s1] sm:$0xff]  ;;  %v21_v2 = vld [vmem:[%s2380_s1 + $0x8] sm:$0xff]  ;;  %104 = vmatprep.mubr.bf16.mxu0 %v1933_v6  ;;  %145 = vmatprep.mubr.bf16.mxu1 %v1933_v6  ;;  %v22_v7 = vld [vmem:[%s2380_s1 + $0x10] sm:$0xff] }
   0x2   :  { %v24_v1 = vld [vmem:[%s2380_s1 + $0x20] sm:$0xff]  ;;  %v25_v4 = vld [vmem:[%s2380_s1 + $0x28] sm:$0xff]  ;;  %v26_v10 = vld [vmem:[%s2380_s1 + $0x30] sm:$0xff] }
   0x3   :  { %v1457_v3 = vcombine.high %v20_v0, %v24_v1  ;;  %v1456_v5 = vcombine.low %v20_v0, %v24_v1  ;;  %v1459_v8 = vcombine.high %v21_v2, %v25_v4  ;;  %v1458_v9 = vcombine.low %v21_v2, %v25_v4  ;;  %v23_v11 = vld [vmem:[%s2380_s1 + $0x18] sm:$0xff]  ;;  %v19_v15 = vld [vmem:[%s2379_s0] sm:$0x1]  ;;  %v1849_v22 = vld [vmem:[%s2381_s2 + $0x48] sm:$0xff]  }
   0x4   :  { %v27_v12 = vld [vmem:[%s2380_s1 + $0x38] sm:$0xff]  ;;  %v1461_v13 = vcombine.high %v22_v7, %v26_v10  ;;  %v1460_v16 = vcombine.low %v22_v7, %v26_v10  ;;  %v1845_v18 = vld [vmem:[%s2381_s2 + $0x40] sm:$0xff]   ;;  %v1850_v23 = vld [vmem:[%s2381_s2 + $0xc8] sm:$0xff]  }
   0x5   :  { %72 = vmatprep.subr.bf16.mxu0 %v1457_v3  ;;  %v1463_v14 = vcombine.high %v23_v11, %v27_v12  ;;  %113 = vmatprep.subr.bf16.mxu1 %v1459_v8  ;;  %v1462_v17 = vcombine.low %v23_v11, %v27_v12  ;;  %v1846_v19 = vld [vmem:[%s2381_s2 + $0xc0] sm:$0xff]   ;;  %v1851_v24 = vld [vmem:[%s2381_s2 + $0x8] sm:$0xff]   ;;  %v1853_v26 = vld [vmem:[%s2381_s2 + $0x50] sm:$0xff]  }
   0x6   :  { %73 = vmatpush1.bf16.msra.mxu0 %v1456_v5  ;;  %114 = vmatpush1.bf16.msra.mxu1 %v1458_v9  ;;  %v1847_v20 = vld [vmem:[%s2381_s2] sm:$0xff]   ;;  %v1852_v25 = vld [vmem:[%s2381_s2 + $0x88] sm:$0xff]   ;;  %v1854_v27 = vld [vmem:[%s2381_s2 + $0xd0] sm:$0xff]  }
   0x7   :  { %154 = vmatprep.subr.bf16.mxu0 %v1461_v13  ;;  %195 = vmatprep.subr.bf16.mxu1 %v1463_v14  ;;  %v1848_v21 = vld [vmem:[%s2381_s2 + $0x80] sm:$0xff]   ;;  %v1855_v28 = vld [vmem:[%s2381_s2 + $0x10] sm:$0xff]   ;;  %v1857_v30 = vld [vmem:[%s2381_s2 + $0x58] sm:$0xff]  }
   0x8   :  { %v1856_v29 = vld [vmem:[%s2381_s2 + $0x90] sm:$0xff]   ;;  %v1858_v31 = vld [vmem:[%s2381_s2 + $0xd8] sm:$0xff]   ;;  %v1861_v34 = vld [vmem:[%s2381_s2 + $0x60] sm:$0xff]  }
   0x9   :  { %1464 = vmatmul.mubr.msk.bf16.vlgmr.msra.gmra.mrb[0].mxu0 %vm68_vm0, %v19_v15  ;;  %1465 = vmatmul.mubr.msk.bf16.vlgmr.msra.gmra.mrb[0].mxu1 %vm68_vm0, %v19_v15  ;;  %v1859_v32 = vld [vmem:[%s2381_s2 + $0x18] sm:$0xff]   ;;  %v1862_v35 = vld [vmem:[%s2381_s2 + $0xe0] sm:$0xff]   ;;  %v1865_v38 = vld [vmem:[%s2381_s2 + $0x68] sm:$0xff]  }
   0xa   :  { %155 = vmatpush1.bf16.msra.mxu0 %v1460_v16  ;;  %196 = vmatpush1.bf16.msra.mxu1 %v1462_v17  ;;  %v1860_v33 = vld [vmem:[%s2381_s2 + $0x98] sm:$0xff]   ;;  %v1863_v36 = vld [vmem:[%s2381_s2 + $0x20] sm:$0xff]   ;;  %v1866_v39 = vld [vmem:[%s2381_s2 + $0xe8] sm:$0xff]  }
   0xb   :  { %186 = vmatprep.mubr.bf16.mxu0 %v1933_v6  ;;  %227 = vmatprep.mubr.bf16.mxu1 %v1933_v6  ;;  %v1864_v37 = vld [vmem:[%s2381_s2 + $0xa0] sm:$0xff]   ;;  %v1867_v40 = vld [vmem:[%s2381_s2 + $0x28] sm:$0xff]   ;;  %v1869_v42 = vld [vmem:[%s2381_s2 + $0x70] sm:$0xff]  }
   0xc   :  { %1545 = vmatprep.subr.bf16.mxu0 %v1845_v18  ;;  %1567 = vmatprep.subr.bf16.mxu1 %v1846_v19  ;;  %v1868_v41 = vld [vmem:[%s2381_s2 + $0xa8] sm:$0xff]   ;;  %v1870_v43 = vld [vmem:[%s2381_s2 + $0xf0] sm:$0xff]  }
   0xd   :  { %v1871_v44 = vld [vmem:[%s2381_s2 + $0x30] sm:$0xff]  }
   0xe   :  { %v1872_v45 = vld [vmem:[%s2381_s2 + $0xb0] sm:$0xff]  }
  0x11   :  { %1466 = vmatmul.mubr.msk.bf16.vlgmr.msra.gmra.mrb[4].mxu0 %vm68_vm0, %v19_v15  ;;  %1467 = vmatmul.mubr.msk.bf16.vlgmr.msra.gmra.mrb[4].mxu1 %vm68_vm0, %v19_v15 }
  0x12   :  { %1546 = vmatpush3.bf16.msra.mxu0 %v1847_v20  ;;  %1568 = vmatpush3.bf16.msra.mxu1 %v1848_v21 }
  0x13   :  { %1547 = vmatprep.subr.bf16.mxu0 %v1849_v22  ;;  %1569 = vmatprep.subr.bf16.mxu1 %v1850_v23 }
  0x16   :  { %1548 = vmatpush3.bf16.msra.mxu0 %v1851_v24  ;;  %1570 = vmatpush3.bf16.msra.mxu1 %v1852_v25 }
  0x17   :  { %1549 = vmatprep.subr.bf16.mxu0 %v1853_v26  ;;  %1571 = vmatprep.subr.bf16.mxu1 %v1854_v27 }
  0x1a   :  { %1550 = vmatpush3.bf16.msra.mxu0 %v1855_v28  ;;  %1572 = vmatpush3.bf16.msra.mxu1 %v1856_v29 }
  0x1b   :  { %1551 = vmatprep.subr.bf16.mxu0 %v1857_v30  ;;  %1573 = vmatprep.subr.bf16.mxu1 %v1858_v31 }
  0x1e   :  { %1552 = vmatpush3.bf16.msra.mxu0 %v1859_v32  ;;  %1574 = vmatpush3.bf16.msra.mxu1 %v1860_v33 }
  0x1f   :  { %1553 = vmatprep.subr.bf16.mxu0 %v1861_v34  ;;  %1575 = vmatprep.subr.bf16.mxu1 %v1862_v35 }
  0x22   :  { %1554 = vmatpush3.bf16.msra.mxu0 %v1863_v36  ;;  %1576 = vmatpush3.bf16.msra.mxu1 %v1864_v37 }
  0x23   :  { %1555 = vmatprep.subr.bf16.mxu0 %v1865_v38  ;;  %1577 = vmatprep.subr.bf16.mxu1 %v1866_v39 }
  0x26   :  { %1556 = vmatpush3.bf16.msra.mxu0 %v1867_v40  ;;  %1578 = vmatpush3.bf16.msra.mxu1 %v1868_v41 }
  0x27   :  { %1557 = vmatprep.subr.bf16.mxu0 %v1869_v42  ;;  %1579 = vmatprep.subr.bf16.mxu1 %v1870_v43 }
  0x2a   :  { %1558 = vmatpush3.bf16.msra.mxu0 %v1871_v44  ;;  %1580 = vmatpush3.bf16.msra.mxu1 %v1872_v45 }
  0x2b   :  { %9 = vsyncpa [#allocation3], 0  ;;  %v1873_v46 = vld [vmem:[%s2381_s2 + $0x78] sm:$0xff]   ;;  %v1877_v50 = vld [vmem:[%s2381_s2 + $0x140] sm:$0xff]   ;;  %v1934_v45 = vmov 0.0|0.0   ;;  %vm1935_vm1 = vmmov 0  }
  0x2c   :  { %v1874_v47 = vld [vmem:[%s2381_s2 + $0xf8] sm:$0xff]   ;;  %1559 = vmatprep.subr.bf16.mxu0 %v1873_v46  ;;  %v1878_v51 = vld [vmem:[%s2381_s2 + $0x1c0] sm:$0xff]   ;;  %v1881_v1 = vld [vmem:[%s2381_s2 + $0x148] sm:$0xff]   ;;  %vm931_vm2 = vcmask 261120   ;;  %vm1019_vm3 = vcmask 523264   ;;  %vm1366_vm4 = vcmask 1041408  }
  0x2d   :  { %v1875_v48 = vld [vmem:[%s2381_s2 + $0x38] sm:$0xff]   ;;  %1581 = vmatprep.subr.bf16.mxu1 %v1874_v47  ;;  %v1879_v59 = vld [vmem:[%s2381_s2 + $0x100] sm:$0xff]   ;;  %v1882_v3 = vld [vmem:[%s2381_s2 + $0x1c8] sm:$0xff]   ;;  %vm1362_vm5 = vcmask 15360   ;;  %s1937_s29 = smov [#allocation2]   ;;  %vm1440_vm6 = vcmask 9216  }
  0x2e   :  { %v1876_v49 = vld [vmem:[%s2381_s2 + $0xb8] sm:$0xff]   ;;  %1560 = vmatpush3.bf16.msra.mxu0 %v1875_v48  ;;  %v1880_v0 = vld [vmem:[%s2381_s2 + $0x180] sm:$0xff]   ;;  %v1883_v4 = vld [vmem:[%s2381_s2 + $0x108] sm:$0xff]   ;;  %s1448_s30 = sshll.u32 %s1937_s29, 4  ;;  %s1449_s30 = int_to_ptr.vmem [resolvable:$true] %s1448_s30 }
  0x2f   :  { %1582 = vmatpush3.bf16.msra.mxu1 %v1876_v49  ;;  %1589 = vmatprep.subr.bf16.mxu0 %v1877_v50  ;;  %v1884_v5 = vld [vmem:[%s2381_s2 + $0x188] sm:$0xff]   ;;  %v1885_v6 = vld [vmem:[%s2381_s2 + $0x150] sm:$0xff]   ;;  %v1889_v16 = vld [vmem:[%s2381_s2 + $0x158] sm:$0xff]   ;;  %v1936_v49 = vmov 0.0   ;;  %s1909_s5 = scalar_lea.vmem %s1449_s30, 32  ;;  %p1914_p1 = scmp.lt.s32.totalorder %s1449_s30, %s1449_s30 }
  0x30   :  { %1611 = vmatprep.subr.bf16.mxu1 %v1878_v51  ;;  %v1886_v7 = vld [vmem:[%s2381_s2 + $0x1d0] sm:$0xff]   ;;  %v1890_v20 = vld [vmem:[%s2381_s2 + $0x1d8] sm:$0xff]   ;;  %v1893_v24 = vld [vmem:[%s2381_s2 + $0x160] sm:$0xff]   ;;  %p1910_p0 = scmp.ne.s32.totalorder %s1449_s30, %s1909_s5  ;;  %p1915_p2 = scmp.lt.s32.totalorder %s1909_s5, %s1909_s5 }
  0x31   :  { %v1887_v11 = vld [vmem:[%s2381_s2 + $0x110] sm:$0xff]   ;;  %v1891_v22 = vld [vmem:[%s2381_s2 + $0x118] sm:$0xff]   ;;  %v1894_v25 = vld [vmem:[%s2381_s2 + $0x1e0] sm:$0xff]  }
  0x32   :  { %v1888_v15 = vld [vmem:[%s2381_s2 + $0x190] sm:$0xff]   ;;  %v1892_v23 = vld [vmem:[%s2381_s2 + $0x198] sm:$0xff]   ;;  %v1895_v26 = vld [vmem:[%s2381_s2 + $0x120] sm:$0xff]   ;;  %p1916_p3 = por %p1915_p2, %p1914_p1 }
  0x33   :  { %v1896_v27 = vld [vmem:[%s2381_s2 + $0x1a0] sm:$0xff]   ;;  %v1897_v28 = vld [vmem:[%s2381_s2 + $0x168] sm:$0xff]   ;;  %v1901_v32 = vld [vmem:[%s2381_s2 + $0x170] sm:$0xff]  }
  0x34   :  { %v1898_v29 = vld [vmem:[%s2381_s2 + $0x1e8] sm:$0xff]   ;;  %v1902_v33 = vld [vmem:[%s2381_s2 + $0x1f0] sm:$0xff]   ;;  %v1905_v36 = vld [vmem:[%s2381_s2 + $0x178] sm:$0xff]   ;;  %p1917_p4 = pnand %p1916_p3, %p1910_p0 }
  0x35   :  { %v1899_v30 = vld [vmem:[%s2381_s2 + $0x128] sm:$0xff]   ;;  %v1903_v34 = vld [vmem:[%s2381_s2 + $0x130] sm:$0xff]   ;;  %v1906_v37 = vld [vmem:[%s2381_s2 + $0x1f8] sm:$0xff]  }
  0x36   :  { %v1900_v31 = vld [vmem:[%s2381_s2 + $0x1a8] sm:$0xff]   ;;  %v1904_v35 = vld [vmem:[%s2381_s2 + $0x1b0] sm:$0xff]   ;;  %v1907_v38 = vld [vmem:[%s2381_s2 + $0x138] sm:$0xff]  }
  0x37   :  { %v1908_v39 = vld [vmem:[%s2381_s2 + $0x1b8] sm:$0xff]   ;;  %v922_v42 = vld [vmem:[%s2382_s3 + $0x8] sm:$0xff]  ;;  %v923_v43 = vld [vmem:[%s2382_s3 + $0x10] sm:$0xff] }
  0x38   :  { %v1781_v44 = vpack.c.bf16 %v923_v43, %v922_v42  ;;  %v924_v46 = vld [vmem:[%s2382_s3 + $0x18] sm:$0xff]  ;;  %v925_v47 = vld [vmem:[%s2382_s3 + $0x20] sm:$0xff]  ;;  %v1006_v50 = vld [vmem:[%s2382_s3 + $0x30] sm:$0xff] }
  0x39   :  { %v1784_v48 = vpack.c.bf16 %v925_v47, %v924_v46  ;;  %v1007_v51 = vld [vmem:[%s2382_s3 + $0x38] sm:$0xff]  ;;  %v1107_v43 = vld [vmem:[%s2382_s3 + $0xe0] sm:$0xff]  ;;  %v1533_v46 = vld [vmem:[%s2382_s3 + $0x28] ss:$0 sm:$0xff] }
  0x3a   :  { %v1106_v42 = vld [vmem:[%s2382_s3 + $0xd8] sm:$0xff] }
  0xdc   :  { %v106_v52 = vpop.f32.mrb[0].mxu0  ;;  %v147_v53 = vpop.f32.mrb[0].mxu1 }
  0xdd   :  { %v108_v54 = vpop.f32.mrb[1].mxu0  ;;  %v238_v55 = vpack.c.bf16 %v147_v53, %v147_v53  ;;  %v149_v57 = vpop.f32.mrb[1].mxu1  ;;  %v236_v60 = vpack.c.bf16 %v106_v52, %v106_v52  ;;  %v1008_v52 = vld [vmem:[%s2382_s3 + $0x40] sm:$0xff]  ;;  %v1787_v53 = vpack.c.bf16 %v1007_v51, %v1006_v50 }
  0xde   :  { %v237_v56 = vpack.c.bf16 %v108_v54, %v108_v54  ;;  %v110_v58 = vpop.f32.mrb[2].mxu0  ;;  %v239_v61 = vpack.c.bf16 %v149_v57, %v149_v57  ;;  %v151_v62 = vpop.f32.mrb[2].mxu1  ;;  %v1009_v54 = vld [vmem:[%s2382_s3 + $0x48] sm:$0xff]  ;;  %v1011_v57 = vld [vmem:[%s2382_s3 + $0x58] sm:$0xff] }
  0xdf   :  { %v111_v63 = vpop.f32.mrb[3].mxu0  ;;  %v152_v2 = vpop.f32.mrb[3].mxu1 }
  0xe0   :  { %793 = vmatprep.mubr.bf16.mxu0 %v237_v56  ;;  %833 = vmatprep.mubr.bf16.mxu1 %v239_v61  ;;  %v1010_v56 = vld [vmem:[%s2382_s3 + $0x50] sm:$0xff]  ;;  %v1468_v61 = vld [vmem:[%s2382_s3] ss:$0 sm:$0xff] }
  0xe1   :  { %794 = vmatmul.mubr.bf16.vlgmr.msra.gmra.mrb[8].mxu0 %v236_v60  ;;  %834 = vmatmul.mubr.bf16.vlgmr.msra.gmra.mrb[8].mxu1 %v238_v55  ;;  %v1790_v55 = vpack.c.bf16 %v1009_v54, %v1008_v52  ;;  %v1793_v58 = vpack.c.bf16 %v1011_v57, %v1010_v56  ;;  %v1108_v52 = vld [vmem:[%s2382_s3 + $0xe8] sm:$0xff]  ;;  %v1188_v57 = vld [vmem:[%s2382_s3 + $0x110] sm:$0xff] }
  0xe2   :  { %1590 = vmatpush3.bf16.msra.mxu0 %v1879_v59  ;;  %1612 = vmatpush3.bf16.msra.mxu1 %v1880_v0  ;;  %v1187_v56 = vld [vmem:[%s2382_s3 + $0x108] sm:$0xff] }
  0xe3   :  { %1591 = vmatprep.subr.bf16.mxu0 %v1881_v1  ;;  %1613 = vmatprep.subr.bf16.mxu1 %v1882_v3 }
  0xe4   :  { %v188_v8 = vpop.f32.mrb[4].mxu0  ;;  %v229_v10 = vpop.f32.mrb[4].mxu1 }
  0xe5   :  { %v190_v9 = vpop.f32.mrb[5].mxu0  ;;  %v231_v14 = vpop.f32.mrb[5].mxu1  ;;  %v242_v40 = vpack.c.bf16 %v229_v10, %v229_v10  ;;  %v240_v41 = vpack.c.bf16 %v188_v8, %v188_v8 }
  0xe6   :  { %1592 = vmatpush3.bf16.msra.mxu0 %v1883_v4  ;;  %v241_v12 = vpack.c.bf16 %v190_v9, %v190_v9  ;;  %v192_v13 = vpop.f32.mrb[6].mxu0  ;;  %1614 = vmatpush3.bf16.msra.mxu1 %v1884_v5  ;;  %v243_v18 = vpack.c.bf16 %v231_v14, %v231_v14  ;;  %v233_v19 = vpop.f32.mrb[6].mxu1 }
  0xe7   :  { %1593 = vmatprep.subr.bf16.mxu0 %v1885_v6  ;;  %v193_v17 = vpop.f32.mrb[7].mxu0  ;;  %1615 = vmatprep.subr.bf16.mxu1 %v1886_v7  ;;  %v234_v21 = vpop.f32.mrb[7].mxu1 }
  0xe8   :  { %873 = vmatprep.mubr.bf16.mxu0 %v241_v12  ;;  %913 = vmatprep.mubr.bf16.mxu1 %v243_v18  ;;  %v1012_v21 = vld [vmem:[%s2382_s3 + $0x60] sm:$0xff] }
  0xea   :  { %1594 = vmatpush3.bf16.msra.mxu0 %v1887_v11  ;;  %1616 = vmatpush3.bf16.msra.mxu1 %v1888_v15 }
  0xeb   :  { %1595 = vmatprep.subr.bf16.mxu0 %v1889_v16  ;;  %1617 = vmatprep.subr.bf16.mxu1 %v1890_v20 }
  0xee   :  { %1596 = vmatpush3.bf16.msra.mxu0 %v1891_v22  ;;  %1618 = vmatpush3.bf16.msra.mxu1 %v1892_v23  ;;  %v1013_v22 = vld [vmem:[%s2382_s3 + $0x68] sm:$0xff] }
  0xef   :  { %1597 = vmatprep.subr.bf16.mxu0 %v1893_v24  ;;  %1619 = vmatprep.subr.bf16.mxu1 %v1894_v25  ;;  %v1796_v23 = vpack.c.bf16 %v1013_v22, %v1012_v21  ;;  %v1094_v24 = vld [vmem:[%s2382_s3 + $0x78] sm:$0xff]  ;;  %v1095_v25 = vld [vmem:[%s2382_s3 + $0x80] sm:$0xff] }
  0xf2   :  { %1598 = vmatpush3.bf16.msra.mxu0 %v1895_v26  ;;  %1620 = vmatpush3.bf16.msra.mxu1 %v1896_v27  ;;  %v1096_v26 = vld [vmem:[%s2382_s3 + $0x88] sm:$0xff]  ;;  %v1799_v27 = vpack.c.bf16 %v1095_v25, %v1094_v24 }
  0xf3   :  { %1599 = vmatprep.subr.bf16.mxu0 %v1897_v28  ;;  %1621 = vmatprep.subr.bf16.mxu1 %v1898_v29  ;;  %v1097_v28 = vld [vmem:[%s2382_s3 + $0x90] sm:$0xff] }
  0xf4   :  { %v1802_v29 = vpack.c.bf16 %v1097_v28, %v1096_v26  ;;  %v1542_v28 = vld [vmem:[%s2382_s3 + $0x178] ss:$0 sm:$0xff] }
  0xf6   :  { %1600 = vmatpush3.bf16.msra.mxu0 %v1899_v30  ;;  %1622 = vmatpush3.bf16.msra.mxu1 %v1900_v31  ;;  %v1098_v30 = vld [vmem:[%s2382_s3 + $0x98] sm:$0xff]  ;;  %v1099_v31 = vld [vmem:[%s2382_s3 + $0xa0] sm:$0xff] }
  0xf7   :  { %1601 = vmatprep.subr.bf16.mxu0 %v1901_v32  ;;  %1623 = vmatprep.subr.bf16.mxu1 %v1902_v33  ;;  %v1805_v32 = vpack.c.bf16 %v1099_v31, %v1098_v30  ;;  %v1100_v33 = vld [vmem:[%s2382_s3 + $0xa8] sm:$0xff] }
  0xfa   :  { %1602 = vmatpush3.bf16.msra.mxu0 %v1903_v34  ;;  %1624 = vmatpush3.bf16.msra.mxu1 %v1904_v35  ;;  %v1101_v34 = vld [vmem:[%s2382_s3 + $0xb0] sm:$0xff] }
  0xfb   :  { %1603 = vmatprep.subr.bf16.mxu0 %v1905_v36  ;;  %1625 = vmatprep.subr.bf16.mxu1 %v1906_v37  ;;  %v1808_v35 = vpack.c.bf16 %v1101_v34, %v1100_v33  ;;  %v1102_v36 = vld [vmem:[%s2382_s3 + $0xb8] sm:$0xff]  ;;  %v1103_v37 = vld [vmem:[%s2382_s3 + $0xc0] sm:$0xff] }
  0xfe   :  { %1604 = vmatpush3.bf16.msra.mxu0 %v1907_v38  ;;  %1626 = vmatpush3.bf16.msra.mxu1 %v1908_v39  ;;  %v1811_v38 = vpack.c.bf16 %v1103_v37, %v1102_v36  ;;  %v1104_v39 = vld [vmem:[%s2382_s3 + $0xc8] sm:$0xff] }
  0xff   :  { %1780 = vmatprep.subr.bf16.mxu0 %v1934_v45  ;;  %1786 = vmatprep.subr.bf16.mxu1 %v1934_v45 }
 0x101   :  { %874 = vmatmul.mubr.bf16.vlgmr.msra.gmra.mrb[12].mxu0 %v240_v41  ;;  %914 = vmatmul.mubr.bf16.vlgmr.msra.gmra.mrb[12].mxu1 %v242_v40  ;;  %v1105_v40 = vld [vmem:[%s2382_s3 + $0xd0] sm:$0xff] }
 0x102   :  { %1782 = vmatpush3.bf16.msra.mxu0 %v1781_v44  ;;  %1688 = vmatprep.mubr.msk.f32.mxu0 %vm1935_vm1, %v1936_v49  ;;  %v1814_v41 = vpack.c.bf16 %v1105_v40, %v1104_v39  ;;  %v1817_v44 = vpack.c.bf16 %v1107_v43, %v1106_v42 }
 0x103   :  { %1783 = vmatprep.subr.bf16.mxu0 %v1934_v45  ;;  %1707 = vmatprep.mubr.msk.f32.mxu1 %vm1935_vm1, %v1936_v49 }
 0x104   :  { %1788 = vmatpush3.bf16.msra.mxu1 %v1787_v53  ;;  %v1109_v53 = vld [vmem:[%s2382_s3 + $0xf0] sm:$0xff] }
 0x105   :  { %1789 = vmatprep.subr.bf16.mxu1 %v1934_v45  ;;  %v1820_v54 = vpack.c.bf16 %v1109_v53, %v1108_v52 }
 0x106   :  { %1785 = vmatpush3.bf16.msra.mxu0 %v1784_v48 }
 0x107   :  { %1798 = vmatprep.subr.bf16.mxu0 %v1934_v45 }
 0x108   :  { %1791 = vmatpush3.bf16.msra.mxu1 %v1790_v55  ;;  %v1186_v55 = vld [vmem:[%s2382_s3 + $0x100] sm:$0xff] }
 0x109   :  { %1792 = vmatprep.subr.bf16.mxu1 %v1934_v45 }
 0x10c   :  { %1794 = vmatpush3.bf16.msra.mxu1 %v1793_v58  ;;  %v1823_v58 = vpack.c.bf16 %v1187_v56, %v1186_v55 }
 0x10d   :  { %1795 = vmatprep.subr.bf16.mxu1 %v1934_v45 }
 0x110   :  { %1797 = vmatpush3.bf16.msra.mxu1 %v1796_v23  ;;  %v1540_v23 = vld [vmem:[%s2382_s3 + $0x168] ss:$0 sm:$0xff] }
 0x111   :  { %1822 = vmatprep.subr.bf16.mxu1 %v1934_v45 }
 0x1b4   :  { %v1561_v59 = vpop.f32.mrb[8].mxu0  ;;  %v1583_v60 = vpop.f32.mrb[8].mxu1 }
 0x1b5   :  { %v1562_v62 = vpop.f32.mrb[9].mxu0  ;;  %v1584_v0 = vpop.f32.mrb[9].mxu1 }
 0x1b6   :  { %v1563_v63 = vadd.f32 %v1562_v62, %v1561_v59  ;;  %v1564_v1 = vpop.f32.mrb[10].mxu0  ;;  %v1585_v2 = vadd.f32 %v1584_v0, %v1583_v60  ;;  %v1586_v3 = vpop.f32.mrb[10].mxu1  ;;  %v1189_v59 = vld [vmem:[%s2382_s3 + $0x118] sm:$0xff]  ;;  %v1191_v62 = vld [vmem:[%s2382_s3 + $0x128] sm:$0xff]  ;;  %v1535_v0 = vld [vmem:[%s2382_s3 + $0x70] ss:$0 sm:$0xff] }
 0x1b7   :  { %v1565_v4 = vpop.f32.mrb[11].mxu0  ;;  %v1587_v6 = vpop.f32.mrb[11].mxu1  ;;  %v1826_v60 = vpack.c.bf16 %v1189_v59, %v1188_v57 }
 0x1b8   :  { %v796_v5 = vadd.f32 %v1563_v63, %v1468_v61  ;;  %v1190_v61 = vld [vmem:[%s2382_s3 + $0x120] sm:$0xff]  ;;  %v1193_v6 = vld [vmem:[%s2382_s3 + $0x138] sm:$0xff] }
 0x1b9   :  { %v1829_v63 = vpack.c.bf16 %v1191_v62, %v1190_v61 }
 0x1ba   :  { %v836_v7 = vadd.f32 %v1585_v2, %v796_v5  ;;  %v1192_v5 = vld [vmem:[%s2382_s3 + $0x130] sm:$0xff] }
 0x1d4   :  { %v1605_v8 = vpop.f32.mrb[12].mxu0  ;;  %v1627_v9 = vpop.f32.mrb[12].mxu1 }
 0x1d5   :  { %v1606_v10 = vpop.f32.mrb[13].mxu0  ;;  %v1628_v12 = vpop.f32.mrb[13].mxu1 }
 0x1d6   :  { %v1607_v11 = vadd.f32 %v1606_v10, %v1605_v8  ;;  %v1608_v13 = vpop.f32.mrb[14].mxu0  ;;  %v1629_v14 = vadd.f32 %v1628_v12, %v1627_v9  ;;  %v1630_v15 = vpop.f32.mrb[14].mxu1  ;;  %v1537_v8 = vld [vmem:[%s2382_s3 + $0xf8] ss:$0 sm:$0xff]  ;;  %v1273_v9 = vld [vmem:[%s2382_s3 + $0x148] sm:$0xff]  ;;  %v1274_v10 = vld [vmem:[%s2382_s3 + $0x150] sm:$0xff] }
 0x1d7   :  { %v1609_v16 = vpop.f32.mrb[15].mxu0  ;;  %v1631_v18 = vpop.f32.mrb[15].mxu1 }
 0x1d8   :  { %v876_v17 = vadd.f32 %v1607_v11, %v836_v7  ;;  %v1832_v7 = vpack.c.bf16 %v1193_v6, %v1192_v5  ;;  %v1275_v16 = vld [vmem:[%s2382_s3 + $0x158] sm:$0xff] }
 0x1da   :  { %v916_v19 = vadd.f32 %v1629_v14, %v876_v17  ;;  %v1835_v14 = vpack.c.bf16 %v1274_v10, %v1273_v9  ;;  %v1276_v17 = vld [vmem:[%s2382_s3 + $0x160] sm:$0xff] }
 0x1db   :  { %v1838_v18 = vpack.c.bf16 %v1276_v17, %v1275_v16 }
 0x1dc   :  { %v921_v20 = vmax.f32 %v916_v19, 0.0  ;;  %v1538_v19 = vld [vmem:[%s2382_s3 + $0x140] ss:$0 sm:$0xff] }
 0x1de   :  { %1689 = vmatmul.mubr.msk.f32.vlgmr.msra.gmra.mrb[16].mxu0 %vm931_vm2, %v921_v20 }
 0x1df   :  { %1742 = vmatprep.mubr.msk.f32.mxu0 %vm1935_vm1, %v1936_v49  ;;  %1800 = vmatpush3.bf16.msra.mxu0 %v1799_v27 }
 0x1e0   :  { %1801 = vmatprep.subr.bf16.mxu0 %v1934_v45 }
 0x1e3   :  { %1803 = vmatpush3.bf16.msra.mxu0 %v1802_v29 }
 0x1e4   :  { %1804 = vmatprep.subr.bf16.mxu0 %v1934_v45 }
 0x1e7   :  { %1806 = vmatpush3.bf16.msra.mxu0 %v1805_v32 }
 0x1e8   :  { %1807 = vmatprep.subr.bf16.mxu0 %v1934_v45 }
 0x1eb   :  { %1809 = vmatpush3.bf16.msra.mxu0 %v1808_v35 }
 0x1ec   :  { %1810 = vmatprep.subr.bf16.mxu0 %v1934_v45 }
 0x1ef   :  { %1812 = vmatpush3.bf16.msra.mxu0 %v1811_v38 }
 0x1f0   :  { %1813 = vmatprep.subr.bf16.mxu0 %v1934_v45 }
 0x1f3   :  { %1815 = vmatpush3.bf16.msra.mxu0 %v1814_v41 }
 0x1f4   :  { %1816 = vmatprep.subr.bf16.mxu0 %v1934_v45 }
 0x1f7   :  { %1818 = vmatpush3.bf16.msra.mxu0 %v1817_v44 }
 0x1f8   :  { %1819 = vmatprep.subr.bf16.mxu0 %v1934_v45 }
 0x1fb   :  { %1821 = vmatpush3.bf16.msra.mxu0 %v1820_v54 }
 0x1fc   :  { %1775 = vmatprep.subr.mxu0 %v1936_v49 }
 0x2b1   :  { %v1001_v47 = vpop.f32.mrb[16].mxu0 }
 0x2b2   :  { %v1002_v48 = vadd.f32 %v1533_v46, %v1001_v47  ;;  %v1690_v50 = vpop.f32.mrb[17].mxu0 }
 0x2b4   :  { %v1005_v51 = vmax.f32 %v1002_v48, 0.0 }
 0x2b6   :  { %1708 = vmatmul.mubr.msk.f32.vlgmr.msra.gmra.mrb[16].mxu1 %vm1019_vm3, %v1005_v51 }
 0x2b7   :  { %1761 = vmatprep.mubr.msk.f32.mxu1 %vm1935_vm1, %v1936_v49  ;;  %1824 = vmatpush3.bf16.msra.mxu1 %v1823_v58 }
 0x2b8   :  { %1825 = vmatprep.subr.bf16.mxu1 %v1934_v45 }
 0x2bb   :  { %1827 = vmatpush3.bf16.msra.mxu1 %v1826_v60 }
 0x2bc   :  { %1828 = vmatprep.subr.bf16.mxu1 %v1934_v45 }
 0x2bf   :  { %1830 = vmatpush3.bf16.msra.mxu1 %v1829_v63 }
 0x2c0   :  { %1831 = vmatprep.subr.bf16.mxu1 %v1934_v45 }
 0x2c3   :  { %1833 = vmatpush3.bf16.msra.mxu1 %v1832_v7 }
 0x2c4   :  { %1834 = vmatprep.subr.bf16.mxu1 %v1934_v45 }
 0x389   :  { %v1089_v1 = vpop.f32.mrb[16].mxu1 }
 0x38a   :  { %v1090_v2 = vadd.f32 %v1535_v0, %v1089_v1  ;;  %v1709_v3 = vpop.f32.mrb[17].mxu1 }
 0x38c   :  { %v1093_v4 = vmax.f32 %v1090_v2, 0.0 }
 0x38e   :  { %1743 = vmatmul.mubr.f32.vlgmr.msra.gmra.mrb[18].mxu0 %v1093_v4 }
 0x38f   :  { %1777 = vmatprep.mubr.msk.f32.mxu0 %vm1935_vm1, %v1936_v49 }
 0x461   :  { %v1181_v11 = vpop.f32.mrb[18].mxu0 }
 0x462   :  { %v1182_v12 = vadd.f32 %v1537_v8, %v1181_v11  ;;  %v1744_v13 = vpop.f32.mrb[19].mxu0 }
 0x464   :  { %v1185_v15 = vmax.f32 %v1182_v12, 0.0 }
 0x466   :  { %1762 = vmatmul.mubr.msk.f32.vlgmr.msra.gmra.mrb[18].mxu1 %vm1019_vm3, %v1185_v15 }
 0x467   :  { %1836 = vmatpush3.bf16.msra.mxu1 %v1835_v14  ;;  %1772 = vmatprep.mubr.msk.f32.mxu1 %vm1935_vm1, %v1936_v49 }
 0x468   :  { %1837 = vmatprep.subr.bf16.mxu1 %v1934_v45  ;;  %v1356_v45 = vld [vmem:[%s2382_s3 + $0x170] sm:$0x3] }
 0x469   :  { %1776 = vmatpush3.msk.msra.mxu0 %vm1366_vm4, %v1356_v45 }
 0x46b   :  { %1839 = vmatpush3.bf16.msra.mxu1 %v1838_v18 }
 0x539   :  { %v1268_v20 = vpop.f32.mrb[18].mxu1 }
 0x53a   :  { %v1269_v21 = vadd.f32 %v1538_v19, %v1268_v20  ;;  %v1763_v22 = vpop.f32.mrb[19].mxu1 }
 0x53c   :  { %v1272_v49 = vmax.f32 %v1269_v21, 0.0 }
 0x53e   :  { %1773 = vmatmul.mubr.msk.f32.vlgmr.msra.gmra.mrb[20].mxu1 %vm931_vm2, %v1272_v49 }
 0x611   :  { %v1351_v24 = vpop.f32.mrb[20].mxu1 }
 0x612   :  { %v1352_v25 = vadd.f32 %v1540_v23, %v1351_v24  ;;  %v1774_v26 = vpop.f32.mrb[21].mxu1 }
 0x614   :  { %v1355_v27 = vmax.f32 %v1352_v25, 0.0 }
 0x616   :  { %1778 = vmatmul.mubr.msk.f32.vlgmr.msra.gmra.mrb[20].mxu0 %vm1362_vm5, %v1355_v27 }
 0x6e9   :  { %v1436_v29 = vpop.f32.mrb[20].mxu0 }
 0x6ea   :  { %v1437_v30 = vadd.f32 %v1542_v28, %v1436_v29  ;;  %v1779_v31 = vpop.f32.mrb[21].mxu0 }
 0x6ec   :  { %1441 = vst.msk [vmem:[#allocation2] sm:$0x3] %vm1440_vm6, %v1437_v30 }
 0x6ed   :  { %1920 = shalt.err (!%p1917_p4)
}
 0x6ee   :  { %s1921_s8 = scalar_lea.hbm %s2383_s4, 32 }
 0x6ef   :  { %p1922_p5 = scmp.ne.s32.totalorder %s2383_s4, %s1921_s8  ;;  %p1925_p6 = scmp.lt.u32.totalorder %s1921_s8, %s2383_s4 }
 0x6f1   :  { %p1927_p7 = pnand %p1925_p6, %p1922_p5 }
 0x6f3   :  { %1930 = shalt.err (!%p1927_p7)
}
 0x6f4   :  { %1451 = dma.vmem_to_hbm [thread:$0]  %s1449_s30, 32, %s2383_s4, [#allocation3]  }
 0x6f5   :  { %1931 = dma.done.wait [#allocation3], 32  }
 0x6f6   :  { %1932 = vsyncadd [#allocation3], 4294967264 }
 0x6f7   :  { %1455 = vsyncpa [#allocation3], 1 }

</bundles_post_ra>
